<compile_context>
chip_gen: v6e
topology: v6e:2x2x1
jax: 0.10.0
libtpu: 0.0.40
codegen_flags: <defaults>
</compile_context>

<pallas_src>
import jax
import jax.numpy as jnp
from jax import lax
from jax.experimental import pallas as pl
from jax.experimental.pallas import tpu as pltpu


def _conv_bn_relu_kernel(w_ref, p_ref, o_ref):
    # w_ref : (Cout, K2C_PAD)      bf16  BN-folded conv weight, bias in col K2C
    # p_ref : (K2C_PAD, N*H*W)     bf16  im2col patches, ones-row at row K2C
    # o_ref : (Cout, N*H*W)        f32   lane-dense output (last dim mult. of 128)
    acc = jnp.dot(w_ref[...], p_ref[...],
                  preferred_element_type=jnp.float32)      # one MXU matmul
    o_ref[...] = jnp.maximum(acc, 0.0)                      # ReLU epilogue in f32


def post_act_conv_block(x_nchw, conv_w, conv_b, bn_gamma, bn_beta, bn_mean, bn_var,
                        *, eps=1e-5, padding=1):
    """x_nchw: (N, C_in, H, W) f32. conv_w: (C_out, C_in, KH, KW). Returns NCHW f32."""
    N, C, H, W = x_nchw.shape
    Cout, Cin, KH, KW = conv_w.shape
    assert Cin == C
    HW = H * W
    NHW = N * HW
    K2C = KH * KW * Cin
    # Pad contraction to a multiple of 8 sublanes, with at least one extra row
    # reserved for the bias ones-row.
    K2C_PAD = ((K2C + 1 + 7) // 8) * 8

    # --- Fold BatchNorm (eval) into conv weight & bias -------------------------
    # BN(conv(x)) = scale*(W*x + b) + shift = (scale*W)*x + (scale*b + shift)
    scale = bn_gamma / jnp.sqrt(bn_var + eps)                       # (Cout,)
    shift = bn_beta - bn_mean * scale                               # (Cout,)
    w_fold = conv_w.astype(jnp.float32) * scale[:, None, None, None]
    b_fold = conv_b.astype(jnp.float32) * scale + shift             # (Cout,)

    # Weight -> (Cout, K2C) with k = (kh*KW + kw)*Cin + ci, then append the bias
    # as an extra contraction column + zero-pad to K2C_PAD.
    w2 = jnp.transpose(w_fold, (0, 2, 3, 1)).reshape(Cout, K2C)
    w_pad = jnp.concatenate(
        [w2, b_fold[:, None],
         jnp.zeros((Cout, K2C_PAD - K2C - 1), jnp.float32)], axis=1)  # (Cout, K2C_PAD)

    # --- im2col in the wrapper (cheap XLA slices at these tiny shapes) ---------
    # TODO(synk): at scaled-up conv shapes, stream the padded image into VMEM and
    # form the taps in-kernel instead of materializing the 9x-inflated patches in HBM.
    x_pad = jnp.pad(x_nchw.astype(jnp.float32),
                    ((0, 0), (0, 0), (padding, padding), (padding, padding)))
    taps = []
    for kh in range(KH):
        for kw in range(KW):
            taps.append(lax.slice(x_pad, (0, 0, kh, kw), (N, C, kh + H, kw + W)))
    # (N, KH*KW, Cin, H, W) -> (N, K2C, HW) -> (K2C, N*HW), column index = n*HW + hw
    patches = jnp.stack(taps, axis=1).reshape(N, K2C, HW)
    patches = jnp.transpose(patches, (1, 0, 2)).reshape(K2C, NHW)
    p_pad = jnp.concatenate(
        [patches,
         jnp.ones((1, NHW), jnp.float32),                       # ones-row -> bias
         jnp.zeros((K2C_PAD - K2C - 1, NHW), jnp.float32)], axis=0)  # (K2C_PAD, NHW)

    # bf16 operands halve DMA bytes; MXU accumulates in f32.
    w_bf = w_pad.astype(jnp.bfloat16)
    p_bf = p_pad.astype(jnp.bfloat16)

    out_flat = pl.pallas_call(
        _conv_bn_relu_kernel,
        out_shape=jax.ShapeDtypeStruct((Cout, NHW), jnp.float32),
        grid_spec=pltpu.PrefetchScalarGridSpec(
            num_scalar_prefetch=0,
            grid=(1,),
            in_specs=[
                pl.BlockSpec((Cout, K2C_PAD), lambda i: (0, 0)),   # folded weight+bias
                pl.BlockSpec((K2C_PAD, NHW), lambda i: (0, 0)),    # padded im2col
            ],
            out_specs=pl.BlockSpec((Cout, NHW), lambda i: (0, 0)),
        ),
        compiler_params=pltpu.CompilerParams(
            dimension_semantics=("arbitrary",)),
    )(w_bf, p_bf)

    # (Cout, N*HW) -> (N, Cout, H, W): tiny 32 KiB XLA transpose in the wrapper.
    return jnp.transpose(out_flat.reshape(Cout, N, H, W), (1, 0, 2, 3))


def _reference(x_nchw, conv_w, conv_b, bn_gamma, bn_beta, bn_mean, bn_var,
               *, eps=1e-5, padding=1):
    # Pure-JAX reference matching PyTorch semantics: conv -> BN(eval) -> ReLU.
    y = lax.conv_general_dilated(
        x_nchw, conv_w, window_strides=(1, 1), padding=[(padding, padding)] * 2,
        dimension_numbers=("NCHW", "OIHW", "NCHW"))
    y = y + conv_b.reshape(1, -1, 1, 1)
    scale = (bn_gamma / jnp.sqrt(bn_var + eps)).reshape(1, -1, 1, 1)
    shift = (bn_beta - bn_mean * bn_gamma / jnp.sqrt(bn_var + eps)).reshape(1, -1, 1, 1)
    y = y * scale + shift
    return jnp.maximum(y, 0.0)


if __name__ == "__main__":
    key = jax.random.PRNGKey(0)
    k = jax.random.split(key, 8)

    N, C_in, H, W = 2, 4, 16, 16
    C_out, K = 16, 3

    x = jax.random.normal(k[0], (N, C_in, H, W), dtype=jnp.float32)

    # Deterministic synthetic parameters (no checkpoint load).
    fan_in = C_in * K * K
    conv_w = jax.random.normal(k[1], (C_out, C_in, K, K), dtype=jnp.float32) / jnp.sqrt(fan_in)
    conv_b = 0.1 * jax.random.normal(k[2], (C_out,), dtype=jnp.float32)

    bn_gamma = 1.0 + 0.1 * jax.random.normal(k[3], (C_out,), dtype=jnp.float32)
    bn_beta = 0.1 * jax.random.normal(k[4], (C_out,), dtype=jnp.float32)
    bn_mean = 0.05 * jax.random.normal(k[5], (C_out,), dtype=jnp.float32)
    bn_var = jnp.abs(jax.random.normal(k[6], (C_out,), dtype=jnp.float32)) + 0.5

    out = post_act_conv_block(x, conv_w, conv_b, bn_gamma, bn_beta, bn_mean, bn_var)
    out = jax.block_until_ready(out)

    ref = _reference(x, conv_w, conv_b, bn_gamma, bn_beta, bn_mean, bn_var)
    assert out.shape == (N, C_out, H, W), out.shape
    # bf16 operands with f32 accumulate -> relaxed tolerance vs f32 reference.
    assert jnp.allclose(out, ref, atol=2e-2, rtol=2e-2), float(jnp.max(jnp.abs(out - ref)))

    print("KERNEL_OK")
</pallas_src>

<mosaic_0001>
module attributes {stable_mosaic.version = 11 : i64} {
  func.func @_conv_bn_relu_kernel(%arg0: i32, %arg1: memref<16x40xbf16, #tpu.memory_space<vmem>>, %arg2: memref<40x512xbf16, #tpu.memory_space<vmem>>, %arg3: memref<16x512xf32, #tpu.memory_space<vmem>>) attributes {dimension_semantics = [#tpu.dimension_semantics<arbitrary>], iteration_bounds = array<i64: 1>, scalar_prefetch = 0 : i64, scratch_operands = 0 : i64, tpu.core_type = #tpu.core_type<tc>, window_params = [{pipeline_mode = #tpu.pipeline_mode<synchronous>, transform_indices = @transform_0, window_bounds = array<i64: 16, 40>}, {pipeline_mode = #tpu.pipeline_mode<synchronous>, transform_indices = @transform_1, window_bounds = array<i64: 40, 512>}, {pipeline_mode = #tpu.pipeline_mode<synchronous>, transform_indices = @transform_2, window_bounds = array<i64: 16, 512>}]} {
    %c0 = arith.constant 0 : index
    %c0_0 = arith.constant 0 : index
    %0 = vector.load %arg1[%c0, %c0_0] : memref<16x40xbf16, #tpu.memory_space<vmem>>, vector<16x40xbf16>
    %c0_1 = arith.constant 0 : index
    %c0_2 = arith.constant 0 : index
    %1 = vector.load %arg2[%c0_1, %c0_2] : memref<40x512xbf16, #tpu.memory_space<vmem>>, vector<40x512xbf16>
    %cst = arith.constant dense<0.000000e+00> : vector<16x512xf32>
    %2 = tpu.matmul %0, %1, %cst {dimension_numbers = #tpu.dot_dimension_numbers<[1], [0], [0], [1], [0, 0, 1, 1], [], []>} : vector<16x40xbf16>, vector<40x512xbf16>, vector<16x512xf32> -> vector<16x512xf32>
    %cst_3 = arith.constant 0.000000e+00 : f32
    %3 = vector.broadcast %cst_3 : f32 to vector<16x512xf32>
    %4 = arith.maximumf %2, %3 : vector<16x512xf32>
    %c0_4 = arith.constant 0 : index
    %c0_5 = arith.constant 0 : index
    %5 = vector.load %arg3[%c0_4, %c0_5] : memref<16x512xf32, #tpu.memory_space<vmem>>, vector<16x512xf32>
    tpu.vector_store %arg3[%c0_4, %c0_5], %4 {strides = array<i32>} : memref<16x512xf32, #tpu.memory_space<vmem>>, vector<16x512xf32>,
    return
  }
  func.func @transform_0(%arg0: i32) -> (i32, i32) {
    %c0_i32 = arith.constant 0 : i32
    %c0_i32_0 = arith.constant 0 : i32
    %c0_i32_1 = arith.constant 0 : i32
    return %c0_i32, %c0_i32_0 : i32, i32
  }
  func.func @transform_1(%arg0: i32) -> (i32, i32) {
    %c0_i32 = arith.constant 0 : i32
    %c0_i32_0 = arith.constant 0 : i32
    %c0_i32_1 = arith.constant 0 : i32
    return %c0_i32, %c0_i32_0 : i32, i32
  }
  func.func @transform_2(%arg0: i32) -> (i32, i32) {
    %c0_i32 = arith.constant 0 : i32
    %c0_i32_0 = arith.constant 0 : i32
    %c0_i32_1 = arith.constant 0 : i32
    return %c0_i32, %c0_i32_0 : i32, i32
  }
}

</mosaic_0001>

<bundles_post_ra>
// kernel: tpu_custom_call.1
= control target key start
LH: loop header
LB: loop body
LE: loop exit
PB: predicated region body
PF: predicated region fallthrough
CT: control target
= control target key end

     0   :  { %7 = vsyncpa [#allocation3], 0  ;;  %s389_s0 = inlined_call_operand.hbm [shape: bf16[16,40], index: 0, kind: input, shape index: {}]   ;;  %s390_s1 = inlined_call_operand.hbm [shape: bf16[40,512], index: 1, kind: input, shape index: {}]   ;;  %s391_s2 = inlined_call_operand.hbm [shape: f32[16,512], index: 2, kind: output, shape index: {}]  }
   0x1   :  { %8 = vsyncpa [#allocation6], 0 }
   0x2   :  { %9 = vsyncpa [#allocation4], 0  ;;  %s355_s9 = smov [#allocation2]  }
   0x3   :  { %s15_s10 = sshll.u32 %s355_s9, 4  ;;  %s16_s10 = int_to_ptr.vmem [resolvable:$true] %s15_s10 }
   0x4   :  { %s297_s11 = scalar_lea.vmem %s16_s10, 128  ;;  %p302_p1 = scmp.lt.s32.totalorder %s16_s10, %s16_s10 }
   0x5   :  { %p298_p0 = scmp.ne.s32.totalorder %s16_s10, %s297_s11  ;;  %p303_p2 = scmp.lt.s32.totalorder %s297_s11, %s297_s11 }
   0x7   :  { %p304_p3 = por %p303_p2, %p302_p1 }
   0x9   :  { %p305_p4 = pnand %p304_p3, %p298_p0 }
   0xb   :  { %308 = shalt.err (!%p305_p4)
}
   0xc   :  { %s356_s12 = smov 64   ;;  %s357_s13 = smov 4  }
   0xd   :  { %21 = dma.hbm_to_vmem [thread:$0]  %s389_s0, 128, %s16_s10, [#allocation3], %s356_s12, %s356_s12, %s357_s13  }
   0xe   :  { %s358_s16 = smov [#allocation5]  }
   0xf   :  { %s27_s17 = sshll.u32 %s358_s16, 4  ;;  %s28_s17 = int_to_ptr.vmem [resolvable:$true] %s27_s17 }
  0x10   :  { %s317_s18 = scalar_lea.vmem %s28_s17, 1280  ;;  %p322_p6 = scmp.lt.s32.totalorder %s28_s17, %s28_s17 }
  0x11   :  { %p318_p5 = scmp.ne.s32.totalorder %s28_s17, %s317_s18  ;;  %p323_p7 = scmp.lt.s32.totalorder %s317_s18, %s317_s18 }
  0x13   :  { %p324_p8 = por %p323_p7, %p322_p6 }
  0x15   :  { %p325_p9 = pnand %p324_p8, %p318_p5 }
  0x17   :  { %328 = shalt.err (!%p325_p9)
}
  0x18   :  { %s359_s19 = smov 256   ;;  %s360_s20 = smov 16  }
  0x19   :  { %33 = dma.hbm_to_vmem [thread:$0]  %s390_s1, 1280, %s28_s17, [#allocation6], %s359_s19, %s359_s19, %s360_s20  }
  0x1a   :  { %349 = dma.done.wait [#allocation3], 128  }
  0x1b   :  { %350 = vsyncadd [#allocation3], 4294967168 }
  0x1c   :  { %351 = dma.done.wait [#allocation6], 1280  }
  0x1d   :  { %352 = vsyncadd [#allocation6], 4294966016  ;;  %v361_v0 = vmov 0   ;;  %v51_v1 = vld [vmem:[#allocation5 + $0x40] sm:$0xff]  ;;  %vm112_vm0 = vcmask 1043456   ;;  %v52_v2 = vld [vmem:[#allocation5 + $0x48] sm:$0xff] }
  0x1e   :  { %157 = vmatprep.mubr.bf16.mxu0 %v361_v0  ;;  %200 = vmatprep.mubr.bf16.mxu1 %v361_v0  ;;  %v255_v3 = vcombine.high %v51_v1, %v51_v1  ;;  %v257_v4 = vcombine.high %v52_v2, %v52_v2  ;;  %v254_v5 = vcombine.low %v51_v1, %v51_v1  ;;  %v276_v7 = vld [vmem:[#allocation5 + $0x24] ss:$16 sps:$4 sm:$0xff]   ;;  %v278_v8 = vld [vmem:[#allocation5 + $0x2c] ss:$16 sps:$4 sm:$0xff]   ;;  %v280_v11 = vld [vmem:[#allocation5 + $0x20] ss:$16 sps:$4 sm:$0xff]  }
  0x1f   :  { %v256_v6 = vcombine.low %v52_v2, %v52_v2  ;;  %v281_v12 = vld [vmem:[#allocation5 + $0x28] ss:$16 sps:$4 sm:$0xff]   ;;  %v282_v13 = vld [vmem:[#allocation5 + $0x4] ss:$16 sps:$4 sm:$0xff]   ;;  %v284_v14 = vld [vmem:[#allocation5 + $0xc] ss:$16 sps:$4 sm:$0xff]  }
  0x20   :  { %258 = vmatprep.subr.msk.bf16.mxu0 %vm112_vm0, %v255_v3  ;;  %260 = vmatprep.subr.msk.bf16.mxu1 %vm112_vm0, %v257_v4  ;;  %v114_v9 = vsel %vm112_vm0, %v254_v5, 0  ;;  %v286_v15 = vld [vmem:[#allocation5] ss:$16 sps:$4 sm:$0xff]   ;;  %v287_v16 = vld [vmem:[#allocation5 + $0x8] ss:$16 sps:$4 sm:$0xff]   ;;  %vm108_vm1 = vcmask 326656  }
  0x21   :  { %v120_v10 = vsel %vm112_vm0, %v256_v6, 0  ;;  %136 = vmatpush1.bf16.msra.mxu0 %v114_v9  ;;  %v288_v17 = vld [vmem:[#allocation2] sm:$0xff]   ;;  %s362_s0 = smov [#allocation7]  }
  0x22   :  { %179 = vmatpush1.bf16.msra.mxu1 %v120_v10  ;;  %137 = vmatprep.subr.bf16.mxu0 %v276_v7  ;;  %s232_s1 = sshll.u32 %s362_s0, 4  ;;  %s233_s1 = int_to_ptr.vmem [resolvable:$true] %s232_s1 }
  0x23   :  { %180 = vmatprep.subr.bf16.mxu1 %v278_v8  ;;  %s329_s23 = scalar_lea.vmem %s233_s1, 1024  ;;  %p334_p11 = scmp.lt.s32.totalorder %s233_s1, %s233_s1 }
  0x24   :  { %p330_p10 = scmp.ne.s32.totalorder %s233_s1, %s329_s23  ;;  %p335_p12 = scmp.lt.s32.totalorder %s329_s23, %s329_s23 }
  0x25   :  { %138 = vmatpush1.bf16.msra.mxu0 %v280_v11 }
  0x26   :  { %181 = vmatpush1.bf16.msra.mxu1 %v281_v12  ;;  %139 = vmatprep.subr.bf16.mxu0 %v282_v13  ;;  %p336_p13 = por %p335_p12, %p334_p11 }
  0x27   :  { %182 = vmatprep.subr.bf16.mxu1 %v284_v14 }
  0x28   :  { %p337_p0 = pnand %p336_p13, %p330_p10 }
  0x29   :  { %140 = vmatpush1.bf16.msra.mxu0 %v286_v15 }
  0x2a   :  { %183 = vmatpush1.bf16.msra.mxu1 %v287_v16 }
  0x2c   :  { %259 = vmatmul.mubr.msk.bf16.vlgmr.msra.gmra.mxu0 %vm108_vm1, %v288_v17 }
  0x2d   :  { %261 = vmatmul.mubr.msk.bf16.vlgmr.msra.gmra.mxu1 %vm108_vm1, %v288_v17 }
  0xec   :  { %v159_v18 = vpop.f32.mrf.mxu0 }
  0xed   :  { %v202_v19 = vpop.f32.mrf.mxu1  ;;  %v211_v20 = vmax.f32 %v159_v18, 0.0 }
  0xee   :  { %v213_v21 = vmax.f32 %v202_v19, 0.0  ;;  %v161_v22 = vpop.f32.mrf.mxu0 }
  0xef   :  { %v204_v23 = vpop.f32.mrf.mxu1  ;;  %219 = vst [vmem:[#allocation7] sm:$0xff] %v211_v20  ;;  %v212_v24 = vmax.f32 %v161_v22, 0.0 }
  0xf0   :  { %221 = vst [vmem:[#allocation7 + $0x10] sm:$0xff] %v213_v21  ;;  %v214_v25 = vmax.f32 %v204_v23, 0.0  ;;  %v163_v26 = vpop.f32.mrf.mxu0 }
  0xf1   :  { %v206_v27 = vpop.f32.mrf.mxu1  ;;  %220 = vst [vmem:[#allocation7 + $0x8] sm:$0xff] %v212_v24  ;;  %v215_v28 = vmax.f32 %v163_v26, 0.0 }
  0xf2   :  { %222 = vst [vmem:[#allocation7 + $0x18] sm:$0xff] %v214_v25  ;;  %v217_v29 = vmax.f32 %v206_v27, 0.0  ;;  %v165_v30 = vpop.f32.mrf.mxu0 }
  0xf3   :  { %v208_v31 = vpop.f32.mrf.mxu1  ;;  %223 = vst [vmem:[#allocation7 + $0x20] sm:$0xff] %v215_v28  ;;  %v216_v32 = vmax.f32 %v165_v30, 0.0 }
  0xf4   :  { %225 = vst [vmem:[#allocation7 + $0x30] sm:$0xff] %v217_v29  ;;  %v218_v33 = vmax.f32 %v208_v31, 0.0 }
  0xf5   :  { %224 = vst [vmem:[#allocation7 + $0x28] sm:$0xff] %v216_v32 }
  0xf6   :  { %226 = vst [vmem:[#allocation7 + $0x38] sm:$0xff] %v218_v33 }
  0xf7   :  { %340 = shalt.err (!%p337_p0)
}
  0xf8   :  { %s363_s24 = smov 512   ;;  %s364_s25 = smov 32  }
  0xf9   :  { %238 = dma.vmem_to_hbm [thread:$0]  %s233_s1, 1024, %s391_s2, [#allocation4], %s363_s24, %s363_s24, %s364_s25  }
  0xfa   :  { %353 = dma.done.wait [#allocation4], 1024  }
  0xfb   :  { %354 = vsyncadd [#allocation4], 4294966272 }
  0xfc   :  { %242 = vsyncpa [#allocation3], 1 }
  0xfd   :  { %243 = vsyncpa [#allocation6], 1 }
  0xfe   :  { %244 = vsyncpa [#allocation4], 1 }

</bundles_post_ra>
